<compile_context>
chip_gen: v5e
topology: v5e:2x2
jax: 0.10.0
libtpu: 0.0.40
codegen_flags: <defaults>
</compile_context>

<pallas_src>
import jax
import jax.numpy as jnp
from jax.experimental import pallas as pl
from jax.experimental.pallas import tpu as pltpu


def _round_up(x, m):
    return ((x + m - 1) // m) * m


def _softplus(x):
    # numerically stable softplus, matches F.softplus (beta=1)
    return jnp.maximum(x, 0.0) + jnp.log1p(jnp.exp(-jnp.abs(x)))


def beta_actor_kernel(state_ref,
                      w1_ref, b1_ref,
                      w2_ref, b2_ref,
                      wh_ref, bh_ref,
                      out_ref):
    x = state_ref[...]                                    # (TB, state_dim) f32

    # layer 1: Linear + tanh (bf16 operands on MXU, f32 accumulate)
    a = jnp.dot(x.astype(w1_ref.dtype), w1_ref[...],
                preferred_element_type=jnp.float32) + b1_ref[...]
    a = jnp.tanh(a)

    # layer 2: Linear + tanh
    a = jnp.dot(a.astype(w2_ref.dtype), w2_ref[...],
                preferred_element_type=jnp.float32) + b2_ref[...]
    a = jnp.tanh(a)

    # fused alpha|beta head: one lane-dense matmul, softplus(.) + 1
    h = jnp.dot(a.astype(wh_ref.dtype), wh_ref[...],
                preferred_element_type=jnp.float32) + bh_ref[...]
    out_ref[...] = (_softplus(h) + 1.0).astype(out_ref.dtype)


def prepare_params(raw, weight_dtype=jnp.bfloat16):
    """ONE-TIME param prep (do this next to the model, NOT per forward call):
      * fuse [W_alpha | W_beta] into one lane-dense head padded to 128 lanes,
      * zero-pad net_width up to a multiple of 128 (exact: zeros propagate),
      * cast weights to bf16; biases stay f32.
    Returns (prepared_param_dict, action_dim)."""
    state_dim, net_width = raw["w1"].shape
    action_dim = raw["w_alpha"].shape[1]
    net_width_p = _round_up(max(net_width, 128), 128)
    head_padded = _round_up(max(2 * action_dim, 128), 128)

    w1 = jnp.zeros((state_dim, net_width_p), jnp.float32)
    w1 = w1.at[:, :net_width].set(raw["w1"])
    b1 = jnp.zeros((1, net_width_p), jnp.float32).at[:, :net_width].set(raw["b1"])

    w2 = jnp.zeros((net_width_p, net_width_p), jnp.float32)
    w2 = w2.at[:net_width, :net_width].set(raw["w2"])
    b2 = jnp.zeros((1, net_width_p), jnp.float32).at[:, :net_width].set(raw["b2"])

    wh = jnp.zeros((net_width_p, head_padded), jnp.float32)
    wh = wh.at[:net_width, :action_dim].set(raw["w_alpha"])
    wh = wh.at[:net_width, action_dim:2 * action_dim].set(raw["w_beta"])
    bh = jnp.zeros((1, head_padded), jnp.float32)
    bh = bh.at[:, :action_dim].set(raw["b_alpha"])
    bh = bh.at[:, action_dim:2 * action_dim].set(raw["b_beta"])

    prep = dict(w1=w1.astype(weight_dtype), b1=b1,
                w2=w2.astype(weight_dtype), b2=b2,
                wh=wh.astype(weight_dtype), bh=bh)
    return prep, action_dim


def beta_actor_forward(state, prep, action_dim):
    """state: (B, state_dim) f32. prep: output of prepare_params.
    Returns (alpha, beta), each (B, action_dim)."""
    B, state_dim = state.shape
    net_width_p = prep["w1"].shape[1]
    head_padded = prep["wh"].shape[1]
    wbytes = jnp.dtype(prep["w1"].dtype).itemsize

    # ---- batch tiling: large tiles amortize per-step overhead; weights stay
    # VMEM-resident (constant index_map) and single-buffered ----------------
    TB = min(512, _round_up(B, 8))
    padded_B = _round_up(B, TB)
    if padded_B != B:
        # Only hit for batches that don't divide TB (pick B as a multiple of
        # TB, or of 8 when B < 512, to avoid this extra HBM copy).
        state = jnp.pad(state, ((0, padded_B - B), (0, 0)))
    grid = (padded_B // TB,)

    def resident(shape):
        # Block index never changes across grid steps -> one DMA, one buffer.
        return pl.BlockSpec(shape, lambda i: (0, 0),
                            pipeline_mode=pl.Buffered(1))

    # ---- explicit VMEM budget (single-buffered weights + 2x io tiles) ------
    resident_bytes = ((state_dim * net_width_p
                       + net_width_p * net_width_p
                       + net_width_p * head_padded) * wbytes
                      + (2 * net_width_p + head_padded) * 4)
    tile_bytes = 2 * TB * (state_dim + head_padded) * 4     # double-buffered
    vmem_limit = int(min(64 << 20,
                         max(32 << 20, 2 * (resident_bytes + tile_bytes))))

    flops = 2 * padded_B * (state_dim * net_width_p
                            + net_width_p * net_width_p
                            + net_width_p * head_padded)
    # tanh ~1 transcendental/elem; softplus (exp + log1p) ~2/elem
    transcendentals = padded_B * (2 * net_width_p + 2 * head_padded)
    bytes_accessed = 4 * padded_B * (state_dim + head_padded) + resident_bytes

    out = pl.pallas_call(
        beta_actor_kernel,
        out_shape=jax.ShapeDtypeStruct((padded_B, head_padded), jnp.float32),
        grid=grid,
        in_specs=[
            pl.BlockSpec((TB, state_dim), lambda i: (i, 0)),   # state tile
            resident((state_dim, net_width_p)),                # w1 (bf16)
            resident((1, net_width_p)),                        # b1
            resident((net_width_p, net_width_p)),              # w2 (bf16)
            resident((1, net_width_p)),                        # b2
            resident((net_width_p, head_padded)),              # fused head W
            resident((1, head_padded)),                        # fused head b
        ],
        out_specs=pl.BlockSpec((TB, head_padded), lambda i: (i, 0)),
        compiler_params=pltpu.CompilerParams(
            dimension_semantics=("parallel",),
            vmem_limit_bytes=vmem_limit),
        cost_estimate=pl.CostEstimate(flops=flops,
                                      transcendentals=transcendentals,
                                      bytes_accessed=bytes_accessed),
    )(state, prep["w1"], prep["b1"], prep["w2"], prep["b2"],
      prep["wh"], prep["bh"])

    alpha = out[:B, :action_dim]
    beta = out[:B, action_dim:2 * action_dim]
    return alpha, beta


def init_params(key, state_dim, action_dim, net_width):
    """Deterministic synthetic init (PyTorch-Linear-style uniform ranges).
    Weights are stored transposed: (in_features, out_features), f32."""
    ks = jax.random.split(key, 8)

    def linear(kw, kb, fan_in, fan_out):
        bound = 1.0 / jnp.sqrt(jnp.float32(fan_in))
        w = jax.random.uniform(kw, (fan_in, fan_out), jnp.float32, -bound, bound)
        b = jax.random.uniform(kb, (1, fan_out), jnp.float32, -bound, bound)
        return w, b

    w1, b1 = linear(ks[0], ks[1], state_dim, net_width)
    w2, b2 = linear(ks[2], ks[3], net_width, net_width)
    w_alpha, b_alpha = linear(ks[4], ks[5], net_width, action_dim)
    w_beta, b_beta = linear(ks[6], ks[7], net_width, action_dim)
    return dict(w1=w1, b1=b1, w2=w2, b2=b2,
                w_alpha=w_alpha, b_alpha=b_alpha,
                w_beta=w_beta, b_beta=b_beta)


def _reference_forward(state, p):
    a = jnp.tanh(state @ p["w1"] + p["b1"])
    a = jnp.tanh(a @ p["w2"] + p["b2"])
    alpha = jax.nn.softplus(a @ p["w_alpha"] + p["b_alpha"]) + 1.0
    beta = jax.nn.softplus(a @ p["w_beta"] + p["b_beta"]) + 1.0
    return alpha, beta


if __name__ == "__main__":
    key = jax.random.PRNGKey(0)
    k_state, k_params = jax.random.split(key)

    batch = 8
    state_dim = 16
    action_dim = 8
    net_width = 32

    state = jax.random.normal(k_state, (batch, state_dim), jnp.float32)
    raw_params = init_params(k_params, state_dim, action_dim, net_width)

    # One-time prep (fusion / padding / bf16 cast) — NOT part of the forward.
    prep, adim = prepare_params(raw_params)

    alpha, beta = beta_actor_forward(state, prep, adim)
    jax.block_until_ready((alpha, beta))

    alpha_ref, beta_ref = _reference_forward(state, raw_params)
    assert alpha.shape == (batch, action_dim) and beta.shape == (batch, action_dim)
    # bf16 weights on the MXU vs a pure-f32 reference -> loosened tolerance.
    assert jnp.allclose(alpha, alpha_ref, atol=5e-2, rtol=5e-2)
    assert jnp.allclose(beta, beta_ref, atol=5e-2, rtol=5e-2)
    # Beta distribution validity: alpha, beta > 1 by construction
    assert bool(jnp.all(alpha > 1.0)) and bool(jnp.all(beta > 1.0))

    print("KERNEL_OK")
</pallas_src>

<mosaic_0001>
module attributes {stable_mosaic.version = 11 : i64} {
  func.func @beta_actor_kernel(%arg0: i32, %arg1: memref<8x16xf32, #tpu.memory_space<vmem>>, %arg2: memref<16x128xbf16, #tpu.memory_space<vmem>>, %arg3: memref<1x128xf32, #tpu.memory_space<vmem>>, %arg4: memref<128x128xbf16, #tpu.memory_space<vmem>>, %arg5: memref<1x128xf32, #tpu.memory_space<vmem>>, %arg6: memref<128x128xbf16, #tpu.memory_space<vmem>>, %arg7: memref<1x128xf32, #tpu.memory_space<vmem>>, %arg8: memref<8x128xf32, #tpu.memory_space<vmem>>) attributes {dimension_semantics = [#tpu.dimension_semantics<parallel>], iteration_bounds = array<i64: 1>, scalar_prefetch = 0 : i64, scratch_operands = 0 : i64, tpu.core_type = #tpu.core_type<tc>, window_params = [{transform_indices = @transform_0, window_bounds = array<i64: 8, 16>}, {pipeline_mode = #tpu.pipeline_mode<synchronous>, transform_indices = @transform_1, window_bounds = array<i64: 16, 128>}, {pipeline_mode = #tpu.pipeline_mode<synchronous>, transform_indices = @transform_2, window_bounds = array<i64: 1, 128>}, {pipeline_mode = #tpu.pipeline_mode<synchronous>, transform_indices = @transform_3, window_bounds = array<i64: 128, 128>}, {pipeline_mode = #tpu.pipeline_mode<synchronous>, transform_indices = @transform_4, window_bounds = array<i64: 1, 128>}, {pipeline_mode = #tpu.pipeline_mode<synchronous>, transform_indices = @transform_5, window_bounds = array<i64: 128, 128>}, {pipeline_mode = #tpu.pipeline_mode<synchronous>, transform_indices = @transform_6, window_bounds = array<i64: 1, 128>}, {transform_indices = @transform_7, window_bounds = array<i64: 8, 128>}]} {
    %c0 = arith.constant 0 : index
    %c0_0 = arith.constant 0 : index
    %0 = vector.load %arg1[%c0, %c0_0] : memref<8x16xf32, #tpu.memory_space<vmem>>, vector<8x16xf32>
    %1 = arith.truncf %0 : vector<8x16xf32> to vector<8x16xbf16>
    %c0_1 = arith.constant 0 : index
    %c0_2 = arith.constant 0 : index
    %2 = vector.load %arg2[%c0_1, %c0_2] : memref<16x128xbf16, #tpu.memory_space<vmem>>, vector<16x128xbf16>
    %cst = arith.constant dense<0.000000e+00> : vector<8x128xf32>
    %3 = tpu.matmul %1, %2, %cst {dimension_numbers = #tpu.dot_dimension_numbers<[1], [0], [0], [1], [0, 0, 1, 1], [], []>} : vector<8x16xbf16>, vector<16x128xbf16>, vector<8x128xf32> -> vector<8x128xf32>
    %c0_3 = arith.constant 0 : index
    %c0_4 = arith.constant 0 : index
    %4 = vector.load %arg3[%c0_3, %c0_4] : memref<1x128xf32, #tpu.memory_space<vmem>>, vector<1x128xf32>
    %5 = vector.broadcast %4 : vector<1x128xf32> to vector<8x128xf32>
    %6 = arith.addf %3, %5 : vector<8x128xf32>
    %7 = math.tanh %6 : vector<8x128xf32>
    %8 = arith.truncf %7 : vector<8x128xf32> to vector<8x128xbf16>
    %c0_5 = arith.constant 0 : index
    %c0_6 = arith.constant 0 : index
    %9 = vector.load %arg4[%c0_5, %c0_6] : memref<128x128xbf16, #tpu.memory_space<vmem>>, vector<128x128xbf16>
    %cst_7 = arith.constant dense<0.000000e+00> : vector<8x128xf32>
    %10 = tpu.matmul %8, %9, %cst_7 {dimension_numbers = #tpu.dot_dimension_numbers<[1], [0], [0], [1], [0, 0, 1, 1], [], []>} : vector<8x128xbf16>, vector<128x128xbf16>, vector<8x128xf32> -> vector<8x128xf32>
    %c0_8 = arith.constant 0 : index
    %c0_9 = arith.constant 0 : index
    %11 = vector.load %arg5[%c0_8, %c0_9] : memref<1x128xf32, #tpu.memory_space<vmem>>, vector<1x128xf32>
    %12 = vector.broadcast %11 : vector<1x128xf32> to vector<8x128xf32>
    %13 = arith.addf %10, %12 : vector<8x128xf32>
    %14 = math.tanh %13 : vector<8x128xf32>
    %15 = arith.truncf %14 : vector<8x128xf32> to vector<8x128xbf16>
    %c0_10 = arith.constant 0 : index
    %c0_11 = arith.constant 0 : index
    %16 = vector.load %arg6[%c0_10, %c0_11] : memref<128x128xbf16, #tpu.memory_space<vmem>>, vector<128x128xbf16>
    %cst_12 = arith.constant dense<0.000000e+00> : vector<8x128xf32>
    %17 = tpu.matmul %15, %16, %cst_12 {dimension_numbers = #tpu.dot_dimension_numbers<[1], [0], [0], [1], [0, 0, 1, 1], [], []>} : vector<8x128xbf16>, vector<128x128xbf16>, vector<8x128xf32> -> vector<8x128xf32>
    %c0_13 = arith.constant 0 : index
    %c0_14 = arith.constant 0 : index
    %18 = vector.load %arg7[%c0_13, %c0_14] : memref<1x128xf32, #tpu.memory_space<vmem>>, vector<1x128xf32>
    %19 = vector.broadcast %18 : vector<1x128xf32> to vector<8x128xf32>
    %20 = arith.addf %17, %19 : vector<8x128xf32>
    %cst_15 = arith.constant 0.000000e+00 : f32
    %21 = vector.broadcast %cst_15 : f32 to vector<8x128xf32>
    %22 = arith.maximumf %20, %21 : vector<8x128xf32>
    %23 = math.absf %20 : vector<8x128xf32>
    %cst_16 = arith.constant 0.000000e+00 : f32
    %24 = vector.broadcast %cst_16 : f32 to vector<8x128xf32>
    %25 = arith.subf %24, %23 : vector<8x128xf32>
    %26 = math.exp %25 : vector<8x128xf32>
    %27 = math.log1p %26 : vector<8x128xf32>
    %28 = arith.addf %22, %27 : vector<8x128xf32>
    %cst_17 = arith.constant 1.000000e+00 : f32
    %29 = vector.broadcast %cst_17 : f32 to vector<8x128xf32>
    %30 = arith.addf %28, %29 : vector<8x128xf32>
    %c0_18 = arith.constant 0 : index
    %c0_19 = arith.constant 0 : index
    %31 = vector.load %arg8[%c0_18, %c0_19] : memref<8x128xf32, #tpu.memory_space<vmem>>, vector<8x128xf32>
    tpu.vector_store %arg8[%c0_18, %c0_19], %30 {strides = array<i32>} : memref<8x128xf32, #tpu.memory_space<vmem>>, vector<8x128xf32>,
    return
  }
  func.func @transform_0(%arg0: i32) -> (i32, i32) {
    %c0_i32 = arith.constant 0 : i32
    %c0_i32_0 = arith.constant 0 : i32
    return %arg0, %c0_i32 : i32, i32
  }
  func.func @transform_1(%arg0: i32) -> (i32, i32) {
    %c0_i32 = arith.constant 0 : i32
    %c0_i32_0 = arith.constant 0 : i32
    %c0_i32_1 = arith.constant 0 : i32
    return %c0_i32, %c0_i32_0 : i32, i32
  }
  func.func @transform_2(%arg0: i32) -> (i32, i32) {
    %c0_i32 = arith.constant 0 : i32
    %c0_i32_0 = arith.constant 0 : i32
    %c0_i32_1 = arith.constant 0 : i32
    return %c0_i32, %c0_i32_0 : i32, i32
  }
  func.func @transform_3(%arg0: i32) -> (i32, i32) {
    %c0_i32 = arith.constant 0 : i32
    %c0_i32_0 = arith.constant 0 : i32
    %c0_i32_1 = arith.constant 0 : i32
    return %c0_i32, %c0_i32_0 : i32, i32
  }
  func.func @transform_4(%arg0: i32) -> (i32, i32) {
    %c0_i32 = arith.constant 0 : i32
    %c0_i32_0 = arith.constant 0 : i32
    %c0_i32_1 = arith.constant 0 : i32
    return %c0_i32, %c0_i32_0 : i32, i32
  }
  func.func @transform_5(%arg0: i32) -> (i32, i32) {
    %c0_i32 = arith.constant 0 : i32
    %c0_i32_0 = arith.constant 0 : i32
    %c0_i32_1 = arith.constant 0 : i32
    return %c0_i32, %c0_i32_0 : i32, i32
  }
  func.func @transform_6(%arg0: i32) -> (i32, i32) {
    %c0_i32 = arith.constant 0 : i32
    %c0_i32_0 = arith.constant 0 : i32
    %c0_i32_1 = arith.constant 0 : i32
    return %c0_i32, %c0_i32_0 : i32, i32
  }
  func.func @transform_7(%arg0: i32) -> (i32, i32) {
    %c0_i32 = arith.constant 0 : i32
    %c0_i32_0 = arith.constant 0 : i32
    return %arg0, %c0_i32 : i32, i32
  }
}

</mosaic_0001>

<bundles_post_ra>
// kernel: tpu_custom_call.1
= control target key start
LH: loop header
LB: loop body
LE: loop exit
PB: predicated region body
PF: predicated region fallthrough
CT: control target
= control target key end

     0   :  { %12 = vsyncpa [#allocation3], 0  ;;  %s625_s0 = inlined_call_operand.hbm [shape: f32[8,16], index: 0, kind: input, shape index: {}]   ;;  %s626_s1 = inlined_call_operand.hbm [shape: bf16[16,128], index: 1, kind: input, shape index: {}]   ;;  %s627_s2 = inlined_call_operand.vmem [shape: f32[1,128], index: 2, kind: input, shape index: {}]   ;;  %s628_s3 = inlined_call_operand.hbm [shape: bf16[128,128], index: 3, kind: input, shape index: {}]   ;;  %s629_s4 = inlined_call_operand.vmem [shape: f32[1,128], index: 4, kind: input, shape index: {}]   ;;  %s630_s5 = inlined_call_operand.hbm [shape: bf16[128,128], index: 5, kind: input, shape index: {}]   ;;  %s631_s6 = inlined_call_operand.vmem [shape: f32[1,128], index: 6, kind: input, shape index: {}]   ;;  %s632_s7 = inlined_call_operand.hbm [shape: f32[8,128], index: 7, kind: output, shape index: {}]  }
   0x1   :  { %13 = vsyncpa [#allocation6], 0 }
   0x2   :  { %14 = vsyncpa [#allocation9], 0  ;;  %s31_s26 = sshll.u32 %s626_s1, 4  ;;  %s32_s26 = int_to_ptr.hbm [resolvable:$true] %s31_s26 }
   0x3   :  { %15 = vsyncpa [#allocation4], 0  ;;  %s554_s27 = smov [#allocation5]   ;;  %s21_s8 = sshll.u32 %s625_s0, 4  ;;  %s22_s8 = int_to_ptr.hbm [resolvable:$true] %s21_s8 }
   0x4   :  { %s33_s28 = sshll.u32 %s554_s27, 4  ;;  %s555_s9 = smov 64   ;;  %s34_s28 = int_to_ptr.vmem [resolvable:$true] %s33_s28 }
   0x5   :  { %s556_s10 = smov 4   ;;  %s557_s11 = smov [#allocation2]  }
   0x6   :  { %39 = dma.hbm_to_vmem [thread:$0]  %s32_s26, 128, %s34_s28, [#allocation6], %s555_s9, %s555_s9, %s556_s10  }
   0x7   :  { %s23_s12 = sshll.u32 %s557_s11, 4  ;;  %s46_s15 = sshll.u32 %s628_s3, 4  ;;  %s24_s12 = int_to_ptr.vmem [resolvable:$true] %s23_s12  ;;  %s47_s15 = int_to_ptr.hbm [resolvable:$true] %s46_s15 }
   0x8   :  { %26 = dma.hbm_to_vmem [thread:$0]  %s22_s8, 128, %s24_s12, [#allocation3]  }
   0x9   :  { %s61_s17 = sshll.u32 %s630_s5, 4  ;;  %s558_s18 = smov [#allocation7]   ;;  %s62_s17 = int_to_ptr.hbm [resolvable:$true] %s61_s17 }
   0xa   :  { %s48_s19 = sshll.u32 %s558_s18, 4  ;;  %s559_s0 = smov [#allocation8]   ;;  %s49_s19 = int_to_ptr.vmem [resolvable:$true] %s48_s19 }
   0xb   :  { %54 = dma.hbm_to_vmem [thread:$0]  %s47_s15, 1024, %s49_s19, [#allocation6], %s555_s9, %s555_s9, %s556_s10  }
   0xc   :  { %s63_s20 = sshll.u32 %s559_s0, 4  ;;  %s64_s20 = int_to_ptr.vmem [resolvable:$true] %s63_s20 }
   0xd   :  { %69 = dma.hbm_to_vmem [thread:$0]  %s62_s17, 1024, %s64_s20, [#allocation9], %s555_s9, %s555_s9, %s556_s10  }
   0xe   :  { %546 = dma.done.wait [#allocation3], 128  }
   0xf   :  { %547 = vsyncadd [#allocation3], 4294967168 }
  0x10   :  { %548 = dma.done.wait [#allocation6], 1152  }
  0x11   :  { %549 = vsyncadd [#allocation6], 4294966144 }
  0x12   :  { %550 = dma.done.wait [#allocation9], 1024  }
  0x13   :  { %551 = vsyncadd [#allocation9], 4294966272  ;;  %v391_v0 = vld [vmem:[#allocation5] sm:$0xff]  ;;  %v89_v1 = vld [vmem:[#allocation2] sm:$0xff]  ;;  %vm103_vm0 = vcmask 130048   ;;  %s310_s26 = sshll.u32 %s632_s7, 4  ;;  %s311_s26 = int_to_ptr.hbm [resolvable:$true] %s310_s26 }
  0x14   :  { %v399_v2 = vld [vmem:[#allocation7 + $0x38] sm:$0xff]  ;;  %v90_v3 = vpack.c.bf16 %v89_v1, %v89_v1  ;;  %114 = vmatpush.bf16.msra.mxu0 %v391_v0  ;;  %v398_v4 = vld [vmem:[#allocation7 + $0x30] sm:$0xff]  ;;  %v397_v5 = vld [vmem:[#allocation7 + $0x28] sm:$0xff] }
  0x15   :  { %190 = vmatpush.bf16.msra.mxu1 %v399_v2  ;;  %v396_v6 = vld [vmem:[#allocation7 + $0x20] sm:$0xff]  ;;  %v395_v7 = vld [vmem:[#allocation7 + $0x18] sm:$0xff]  ;;  %v394_v8 = vld [vmem:[#allocation7 + $0x10] sm:$0xff] }
  0x16   :  { %v393_v9 = vld [vmem:[#allocation7 + $0x8] sm:$0xff]  ;;  %v392_v10 = vld [vmem:[#allocation7] sm:$0xff]  ;;  %v407_v11 = vld [vmem:[#allocation8 + $0x38] sm:$0xff] }
  0x17   :  { %326 = vmatmul.msk.bf16.vlgmr.msra.gmra.mxu0 %vm103_vm0, %v90_v3  ;;  %273 = vmatpush.bf16.msra.mxu2 %v407_v11  ;;  %v406_v12 = vld [vmem:[#allocation8 + $0x30] sm:$0xff]  ;;  %v405_v13 = vld [vmem:[#allocation8 + $0x28] sm:$0xff]  ;;  %v404_v14 = vld [vmem:[#allocation8 + $0x20] sm:$0xff] }
  0x18   :  { %v403_v15 = vld [vmem:[#allocation8 + $0x18] sm:$0xff]  ;;  %v415_v16 = vld [vmem:[%s627_s2] ss:$0 sm:$0xff]  ;;  %v401_v23 = vld [vmem:[#allocation8 + $0x8] sm:$0xff] }
  0x19   :  { %191 = vmatpush.bf16.msra.mxu1 %v398_v4  ;;  %v402_v22 = vld [vmem:[#allocation8 + $0x10] sm:$0xff]  ;;  %v400_v24 = vld [vmem:[#allocation8] sm:$0xff] }
  0x1a   :  { %v416_v25 = vld [vmem:[%s629_s4] ss:$0 sm:$0xff]  ;;  %s560_s4 = smov [#allocation10]  }
  0x1b   :  { %274 = vmatpush.bf16.msra.mxu2 %v406_v12  ;;  %v417_v31 = vld [vmem:[%s631_s6] ss:$0 sm:$0xff]  ;;  %s308_s6 = sshll.u32 %s560_s4, 4  ;;  %s309_s6 = int_to_ptr.vmem [resolvable:$true] %s308_s6 }
  0x1d   :  { %192 = vmatpush.bf16.msra.mxu1 %v397_v5 }
  0x1f   :  { %275 = vmatpush.bf16.msra.mxu2 %v405_v13 }
  0x21   :  { %193 = vmatpush.bf16.msra.mxu1 %v396_v6 }
  0x23   :  { %276 = vmatpush.bf16.msra.mxu2 %v404_v14 }
  0x25   :  { %194 = vmatpush.bf16.msra.mxu1 %v395_v7 }
  0x27   :  { %277 = vmatpush.bf16.msra.mxu2 %v403_v15 }
  0x29   :  { %195 = vmatpush.bf16.msra.mxu1 %v394_v8 }
  0x2b   :  { %278 = vmatpush.bf16.msra.mxu2 %v402_v22 }
  0x2d   :  { %196 = vmatpush.bf16.msra.mxu1 %v393_v9 }
  0x2f   :  { %279 = vmatpush.bf16.msra.mxu2 %v401_v23 }
  0x31   :  { %197 = vmatpush.bf16.msra.mxu1 %v392_v10 }
  0x33   :  { %280 = vmatpush.bf16.msra.mxu2 %v400_v24 }
  0x94   :  { %v116_v17 = vpop.f32.mrf.mxu0 }
  0x95   :  { %v117_v18 = vadd.f32 %v415_v16, %v116_v17 }
  0x97   :  { %418 = vtanh.f32 %v117_v18 }
  0x9c   :  { %v118_v19 = vpop.f32.mrf.mxu0 }
  0x9d   :  { %v419_v20 = vpop.eup %418 }
  0x9e   :  { %v121_v21 = vpack.c.bf16 %v419_v20, %v419_v20 }
  0xa0   :  { %198 = vmatmul.bf16.vlgmr.msra.gmra.mxu1 %v121_v21 }
 0x11d   :  { %v199_v26 = vpop.f32.mrf.mxu1 }
 0x11e   :  { %v200_v27 = vadd.f32 %v416_v25, %v199_v26 }
 0x120   :  { %420 = vtanh.f32 %v200_v27 }
 0x125   :  { %v201_v28 = vpop.f32.mrf.mxu1 }
 0x126   :  { %v421_v29 = vpop.eup %420 }
 0x127   :  { %v204_v30 = vpack.c.bf16 %v421_v29, %v421_v29 }
 0x129   :  { %281 = vmatmul.bf16.vlgmr.msra.gmra.mxu2 %v204_v30 }
 0x1ac   :  { %v282_v32 = vpop.f32.mrf.mxu2 }
 0x1ad   :  { %v283_v33 = vadd.f32 %v417_v31, %v282_v32 }
 0x1af   :  { %v287_v34 = vand.u32 2147483647, %v283_v33  ;;  %v286_v46 = vmax.f32 %v283_v33, 0.0 }
 0x1b1   :  { %v288_v35 = vsub.f32 0.0, %v287_v34 }
 0x1b3   :  { %v289_v36 = vmul.f32 1.442695, %v288_v35 }
 0x1b4   :  { %v284_v37 = vpop.f32.mrf.mxu2 }
 0x1b5   :  { %422 = vpow2.f32 %v289_v36 }
 0x1bb   :  { %v423_v38 = vpop.eup %422 }
 0x1bc   :  { %v291_v39 = vadd.f32 1.0, %v423_v38  ;;  %v294_v40 = vmul.f32 -0.5, %v423_v38  ;;  %v297_v42 = vand.u32 2147483647, %v423_v38 }
 0x1be   :  { %424 = vlog2.f32 %v291_v39  ;;  %v295_v41 = vadd.f32 1.0, %v294_v40  ;;  %vm298_vm1 = vcmp.lt.f32.partialorder %v297_v42, 0.0004427343 }
 0x1c0   :  { %v296_v45 = vmul.f32 %v423_v38, %v295_v41 }
 0x1c4   :  { %v425_v43 = vpop.eup %424 }
 0x1c5   :  { %v293_v44 = vmul.f32 0.6931472, %v425_v43 }
 0x1c7   :  { %v299_v47 = vsel %vm298_vm1, %v296_v45, %v293_v44 }
 0x1c8   :  { %v300_v48 = vadd.f32 %v299_v47, %v286_v46 }
 0x1ca   :  { %v301_v49 = vadd.f32 1.0, %v300_v48 }
 0x1cc   :  { %302 = vst [vmem:[#allocation10] sm:$0xff] %v301_v49 }
 0x1cd   :  { %313 = dma.vmem_to_hbm [thread:$0]  %s309_s6, 128, %s311_s26, [#allocation4]  }
 0x1ce   :  { %552 = dma.done.wait [#allocation4], 128  }
 0x1cf   :  { %553 = vsyncadd [#allocation4], 4294967168 }
 0x1d0   :  { %318 = vsyncpa [#allocation3], 1 }
 0x1d1   :  { %319 = vsyncpa [#allocation6], 1 }
 0x1d2   :  { %320 = vsyncpa [#allocation9], 1 }
 0x1d3   :  { %321 = vsyncpa [#allocation4], 1 }

</bundles_post_ra>
